<compile_context>
chip_gen: v5e
topology: v5e:2x2
jax: 0.10.0
libtpu: 0.0.40
codegen_flags: <defaults>
</compile_context>

<pallas_src>
import functools

import jax
import jax.numpy as jnp
from jax.experimental import pallas as pl
from jax.experimental.pallas import tpu as pltpu


def _round_up(v, m):
    return (v + m - 1) // m * m


def _latent_kernel(num_hidden_layers, compute_dtype,
                   x_ref, w_in_ref, b_in_ref, w_h_ref, b_h_ref,
                   w_out_ref, b_out_ref,
                   o1_ref, o2_ref):
    # x_ref:     (1, C_in, Tt)   lane dim = Tt (multiple of 128 -> lane-dense)
    # w_in_ref:  (H, C_in)       b_in_ref:  (H, 1)        (f32 biases)
    # w_h_ref:   (L, H, H)       b_h_ref:   (L, H, 1)
    # w_out_ref: (2*D, H)        b_out_ref: (2*D, 1)      (fused heads)
    # o1_ref/o2_ref: (1, D, Tt)
    x = x_ref[0].astype(compute_dtype)                       # in-kernel cast

    # Input layer: MXU matmul with f32 accumulation; bias-add + tanh in f32
    # (v5e-safe), then a single cast so h stays in compute_dtype.
    acc = (jnp.dot(w_in_ref[...], x, preferred_element_type=jnp.float32)
           + b_in_ref[...])                                  # (H, Tt) f32
    h = jnp.tanh(acc).astype(compute_dtype)                  # (H, Tt)

    for l in range(num_hidden_layers):                       # static unroll
        acc = (jnp.dot(w_h_ref[l], h, preferred_element_type=jnp.float32)
               + b_h_ref[l])
        h = jnp.tanh(acc).astype(compute_dtype)

    out = (jnp.dot(w_out_ref[...], h, preferred_element_type=jnp.float32)
           + b_out_ref[...])                                 # (2*D, Tt) f32

    d = o1_ref.shape[1]
    o1_ref[0] = out[:d].astype(o1_ref.dtype)
    o2_ref[0] = out[d:].astype(o2_ref.dtype)


def latent_layer_forward(x_nct, params, *, tile_t=1024,
                         compute_dtype=jnp.bfloat16, out_dtype=None):
    """x_nct: (N, C_in, T). Returns (out1, out2), each (N, D_out, T) in NCT.

    out_dtype defaults to compute_dtype (bf16) to minimize HBM write traffic;
    pass out_dtype=jnp.float32 (and compute_dtype=jnp.float32) for a
    debug/accuracy path.
    """
    (w_in, b_in, w_h, b_h, w1, b1, w2, b2) = params
    N, C_in, T = x_nct.shape
    H = w_in.shape[0]
    D_out = w1.shape[0]
    L = w_h.shape[0]
    out_dtype = compute_dtype if out_dtype is None else out_dtype

    # Fuse the two output heads into one matmul (tiny, one-time).
    w_out = jnp.concatenate([w1, w2], axis=0)                # (2*D, H)
    b_out = jnp.concatenate([b1, b2], axis=0)                # (2*D, 1)

    # Lane-dense time tile (multiple of 128). No padding of x and no slicing
    # of the outputs: the last ragged tile's out-of-range stores are masked.
    tile_t = _round_up(max(int(tile_t), 128), 128)
    tile_t = min(tile_t, _round_up(T, 128))
    num_t = -(-T // tile_t)
    # v7x has 2 TensorCores: ensure >=2 parallel blocks when the problem allows.
    if N * num_t < 2 and T > 128:
        tile_t = _round_up(-(-T // 2), 128)
        num_t = -(-T // tile_t)

    # Weights in compute dtype (tiny, resident); biases stay f32.
    w_in_c = w_in.astype(compute_dtype)
    w_h_c = w_h.astype(compute_dtype)
    w_out_c = w_out.astype(compute_dtype)
    b_in_f = b_in.astype(jnp.float32)
    b_h_f = b_h.astype(jnp.float32)
    b_out_f = b_out.astype(jnp.float32)

    kernel = functools.partial(_latent_kernel, L, compute_dtype)
    grid = (N, num_t)
    const2 = lambda n, t: (0, 0)
    const3 = lambda n, t: (0, 0, 0)

    itemsize = lambda dt: jnp.dtype(dt).itemsize
    flops = 2 * N * T * (H * C_in + L * H * H + 2 * D_out * H)
    transcendentals = N * T * H * (L + 1)
    bytes_accessed = (
        N * C_in * T * itemsize(x_nct.dtype)                      # x stream
        + 2 * N * D_out * T * itemsize(out_dtype)                 # two outputs
        + (H * C_in + L * H * H + 2 * D_out * H) * itemsize(compute_dtype)
        + (H + L * H + 2 * D_out) * 4)                            # f32 biases
    cost = pl.CostEstimate(flops=flops, transcendentals=transcendentals,
                           bytes_accessed=bytes_accessed)

    out1, out2 = pl.pallas_call(
        kernel,
        out_shape=(jax.ShapeDtypeStruct((N, D_out, T), out_dtype),
                   jax.ShapeDtypeStruct((N, D_out, T), out_dtype)),
        grid_spec=pltpu.PrefetchScalarGridSpec(
            num_scalar_prefetch=0,
            grid=grid,
            in_specs=[
                pl.BlockSpec((1, C_in, tile_t), lambda n, t: (n, 0, t)),  # x
                pl.BlockSpec((H, C_in), const2),                          # w_in
                pl.BlockSpec((H, 1), const2),                             # b_in
                pl.BlockSpec((L, H, H), const3),                          # w_hidden
                pl.BlockSpec((L, H, 1), const3),                          # b_hidden
                pl.BlockSpec((2 * D_out, H), const2),                     # w_out (fused)
                pl.BlockSpec((2 * D_out, 1), const2),                     # b_out (fused)
            ],
            out_specs=[
                pl.BlockSpec((1, D_out, tile_t), lambda n, t: (n, 0, t)),
                pl.BlockSpec((1, D_out, tile_t), lambda n, t: (n, 0, t)),
            ],
        ),
        compiler_params=pltpu.CompilerParams(
            dimension_semantics=("parallel", "parallel")),
        cost_estimate=cost,
    )(x_nct, w_in_c, b_in_f, w_h_c, b_h_f, w_out_c, b_out_f)

    return out1, out2


def init_params(key, tcn_dim, latent_dim_in, latent_dim_out, hidden_dim,
                num_hidden_layers):
    """Synthetic init mimicking nn.Conv1d uniform(-k, k); conv-native layout.

    Weights: (C_out, C_in); biases: (C_out, 1)."""
    c_in = tcn_dim + latent_dim_in
    keys = jax.random.split(key, 8)

    def u(k, shape, fan_in):
        bound = 1.0 / jnp.sqrt(jnp.float32(fan_in))
        return jax.random.uniform(k, shape, jnp.float32, -bound, bound)

    w_in = u(keys[0], (hidden_dim, c_in), c_in)
    b_in = u(keys[1], (hidden_dim, 1), c_in)
    w_h = u(keys[2], (num_hidden_layers, hidden_dim, hidden_dim), hidden_dim)
    b_h = u(keys[3], (num_hidden_layers, hidden_dim, 1), hidden_dim)
    w1 = u(keys[4], (latent_dim_out, hidden_dim), hidden_dim)
    b1 = u(keys[5], (latent_dim_out, 1), hidden_dim)
    w2 = u(keys[6], (latent_dim_out, hidden_dim), hidden_dim)
    b2 = u(keys[7], (latent_dim_out, 1), hidden_dim)
    return (w_in, b_in, w_h, b_h, w1, b1, w2, b2)


def reference_forward(x_nct, params):
    """Pure-JAX f32 reference matching the PyTorch module semantics (NCT)."""
    (w_in, b_in, w_h, b_h, w1, b1, w2, b2) = params
    h = jnp.tanh(jnp.einsum('oi,nit->not', w_in, x_nct) + b_in[None])
    for l in range(w_h.shape[0]):
        h = jnp.tanh(jnp.einsum('oi,nit->not', w_h[l], h) + b_h[l][None])
    o1 = jnp.einsum('oi,nit->not', w1, h) + b1[None]
    o2 = jnp.einsum('oi,nit->not', w2, h) + b2[None]
    return o1, o2


if __name__ == "__main__":
    # Small shapes consistent with the module's forward.
    batch = 2
    tcn_dim = 16
    latent_dim_in = 16
    latent_dim_out = 16
    hidden_dim = 32
    num_hidden_layers = 2
    seq = 200  # not a multiple of 128 -> exercises the masked ragged tile

    key = jax.random.PRNGKey(0)
    k_x, k_p = jax.random.split(key)
    x = jax.random.normal(
        k_x, (batch, tcn_dim + latent_dim_in, seq), jnp.float32)

    params = init_params(k_p, tcn_dim, latent_dim_in, latent_dim_out,
                         hidden_dim, num_hidden_layers)

    # Production path: bf16 operands + bf16 outputs (minimal HBM traffic).
    o1_bf16, o2_bf16 = latent_layer_forward(x, params)
    # Debug/accuracy path: f32 everywhere (MXU-emulated f32 -> do not ship).
    o1_f32, o2_f32 = latent_layer_forward(
        x, params, compute_dtype=jnp.float32, out_dtype=jnp.float32)
    jax.block_until_ready((o1_bf16, o2_bf16, o1_f32, o2_f32))

    ref1, ref2 = reference_forward(x, params)

    assert o1_bf16.shape == (batch, latent_dim_out, seq)
    assert o2_bf16.shape == (batch, latent_dim_out, seq)
    assert o1_f32.shape == (batch, latent_dim_out, seq)
    assert o2_f32.shape == (batch, latent_dim_out, seq)

    assert jnp.allclose(o1_f32, ref1, atol=1e-4, rtol=1e-4)
    assert jnp.allclose(o2_f32, ref2, atol=1e-4, rtol=1e-4)
    assert jnp.allclose(o1_bf16.astype(jnp.float32), ref1, atol=5e-2, rtol=5e-2)
    assert jnp.allclose(o2_bf16.astype(jnp.float32), ref2, atol=5e-2, rtol=5e-2)

    print("KERNEL_OK")
</pallas_src>

<mosaic_0001>
module attributes {stable_mosaic.version = 11 : i64} {
  func.func @_latent_kernel(%arg0: i32, %arg1: i32, %arg2: memref<1x32x256xf32, #tpu.memory_space<vmem>>, %arg3: memref<32x32xbf16, #tpu.memory_space<vmem>>, %arg4: memref<32x1xf32, #tpu.memory_space<vmem>>, %arg5: memref<2x32x32xbf16, #tpu.memory_space<vmem>>, %arg6: memref<2x32x1xf32, #tpu.memory_space<vmem>>, %arg7: memref<32x32xbf16, #tpu.memory_space<vmem>>, %arg8: memref<32x1xf32, #tpu.memory_space<vmem>>, %arg9: memref<1x16x256xbf16, #tpu.memory_space<vmem>>, %arg10: memref<1x16x256xbf16, #tpu.memory_space<vmem>>) attributes {dimension_semantics = [#tpu.dimension_semantics<parallel>, #tpu.dimension_semantics<parallel>], iteration_bounds = array<i64: 2, 1>, scalar_prefetch = 0 : i64, scratch_operands = 0 : i64, tpu.core_type = #tpu.core_type<tc>, window_params = [{transform_indices = @transform_0, window_bounds = array<i64: 1, 32, 256>}, {pipeline_mode = #tpu.pipeline_mode<synchronous>, transform_indices = @transform_1, window_bounds = array<i64: 32, 32>}, {pipeline_mode = #tpu.pipeline_mode<synchronous>, transform_indices = @transform_2, window_bounds = array<i64: 32, 1>}, {pipeline_mode = #tpu.pipeline_mode<synchronous>, transform_indices = @transform_3, window_bounds = array<i64: 2, 32, 32>}, {pipeline_mode = #tpu.pipeline_mode<synchronous>, transform_indices = @transform_4, window_bounds = array<i64: 2, 32, 1>}, {pipeline_mode = #tpu.pipeline_mode<synchronous>, transform_indices = @transform_5, window_bounds = array<i64: 32, 32>}, {pipeline_mode = #tpu.pipeline_mode<synchronous>, transform_indices = @transform_6, window_bounds = array<i64: 32, 1>}, {transform_indices = @transform_7, window_bounds = array<i64: 1, 16, 256>}, {transform_indices = @transform_8, window_bounds = array<i64: 1, 16, 256>}]} {
    %c0 = arith.constant 0 : index
    %c0_0 = arith.constant 0 : index
    %c0_1 = arith.constant 0 : index
    %0 = vector.load %arg2[%c0, %c0_0, %c0_1] : memref<1x32x256xf32, #tpu.memory_space<vmem>>, vector<1x32x256xf32>
    %1 = vector.shape_cast %0 : vector<1x32x256xf32> to vector<32x256xf32>
    %2 = arith.truncf %1 : vector<32x256xf32> to vector<32x256xbf16>
    %c0_2 = arith.constant 0 : index
    %c0_3 = arith.constant 0 : index
    %3 = vector.load %arg3[%c0_2, %c0_3] : memref<32x32xbf16, #tpu.memory_space<vmem>>, vector<32x32xbf16>
    %cst = arith.constant dense<0.000000e+00> : vector<32x256xf32>
    %4 = tpu.matmul %3, %2, %cst {dimension_numbers = #tpu.dot_dimension_numbers<[1], [0], [0], [1], [0, 0, 1, 1], [], []>} : vector<32x32xbf16>, vector<32x256xbf16>, vector<32x256xf32> -> vector<32x256xf32>
    %c0_4 = arith.constant 0 : index
    %c0_5 = arith.constant 0 : index
    %5 = vector.load %arg4[%c0_4, %c0_5] : memref<32x1xf32, #tpu.memory_space<vmem>>, vector<32x1xf32>
    %6 = vector.broadcast %5 : vector<32x1xf32> to vector<32x256xf32>
    %7 = arith.addf %4, %6 : vector<32x256xf32>
    %8 = math.tanh %7 : vector<32x256xf32>
    %9 = arith.truncf %8 : vector<32x256xf32> to vector<32x256xbf16>
    %c0_6 = arith.constant 0 : index
    %c0_7 = arith.constant 0 : index
    %c0_8 = arith.constant 0 : index
    %10 = vector.load %arg5[%c0_6, %c0_7, %c0_8] : memref<2x32x32xbf16, #tpu.memory_space<vmem>>, vector<1x32x32xbf16>
    %11 = vector.shape_cast %10 : vector<1x32x32xbf16> to vector<32x32xbf16>
    %cst_9 = arith.constant dense<0.000000e+00> : vector<32x256xf32>
    %12 = tpu.matmul %11, %9, %cst_9 {dimension_numbers = #tpu.dot_dimension_numbers<[1], [0], [0], [1], [0, 0, 1, 1], [], []>} : vector<32x32xbf16>, vector<32x256xbf16>, vector<32x256xf32> -> vector<32x256xf32>
    %c0_10 = arith.constant 0 : index
    %c0_11 = arith.constant 0 : index
    %c0_12 = arith.constant 0 : index
    %13 = vector.load %arg6[%c0_10, %c0_11, %c0_12] : memref<2x32x1xf32, #tpu.memory_space<vmem>>, vector<1x32x1xf32>
    %14 = vector.shape_cast %13 : vector<1x32x1xf32> to vector<32x1xf32>
    %15 = vector.broadcast %14 : vector<32x1xf32> to vector<32x256xf32>
    %16 = arith.addf %12, %15 : vector<32x256xf32>
    %17 = math.tanh %16 : vector<32x256xf32>
    %18 = arith.truncf %17 : vector<32x256xf32> to vector<32x256xbf16>
    %c1 = arith.constant 1 : index
    %c0_13 = arith.constant 0 : index
    %c0_14 = arith.constant 0 : index
    %19 = vector.load %arg5[%c1, %c0_13, %c0_14] : memref<2x32x32xbf16, #tpu.memory_space<vmem>>, vector<1x32x32xbf16>
    %20 = vector.shape_cast %19 : vector<1x32x32xbf16> to vector<32x32xbf16>
    %cst_15 = arith.constant dense<0.000000e+00> : vector<32x256xf32>
    %21 = tpu.matmul %20, %18, %cst_15 {dimension_numbers = #tpu.dot_dimension_numbers<[1], [0], [0], [1], [0, 0, 1, 1], [], []>} : vector<32x32xbf16>, vector<32x256xbf16>, vector<32x256xf32> -> vector<32x256xf32>
    %c1_16 = arith.constant 1 : index
    %c0_17 = arith.constant 0 : index
    %c0_18 = arith.constant 0 : index
    %22 = vector.load %arg6[%c1_16, %c0_17, %c0_18] : memref<2x32x1xf32, #tpu.memory_space<vmem>>, vector<1x32x1xf32>
    %23 = vector.shape_cast %22 : vector<1x32x1xf32> to vector<32x1xf32>
    %24 = vector.broadcast %23 : vector<32x1xf32> to vector<32x256xf32>
    %25 = arith.addf %21, %24 : vector<32x256xf32>
    %26 = math.tanh %25 : vector<32x256xf32>
    %27 = arith.truncf %26 : vector<32x256xf32> to vector<32x256xbf16>
    %c0_19 = arith.constant 0 : index
    %c0_20 = arith.constant 0 : index
    %28 = vector.load %arg7[%c0_19, %c0_20] : memref<32x32xbf16, #tpu.memory_space<vmem>>, vector<32x32xbf16>
    %cst_21 = arith.constant dense<0.000000e+00> : vector<32x256xf32>
    %29 = tpu.matmul %28, %27, %cst_21 {dimension_numbers = #tpu.dot_dimension_numbers<[1], [0], [0], [1], [0, 0, 1, 1], [], []>} : vector<32x32xbf16>, vector<32x256xbf16>, vector<32x256xf32> -> vector<32x256xf32>
    %c0_22 = arith.constant 0 : index
    %c0_23 = arith.constant 0 : index
    %30 = vector.load %arg8[%c0_22, %c0_23] : memref<32x1xf32, #tpu.memory_space<vmem>>, vector<32x1xf32>
    %31 = vector.broadcast %30 : vector<32x1xf32> to vector<32x256xf32>
    %32 = arith.addf %29, %31 : vector<32x256xf32>
    %33 = vector.extract_strided_slice %32 {offsets = [0, 0], sizes = [16, 256], strides = [1, 1]} : vector<32x256xf32> to vector<16x256xf32>
    %34 = arith.truncf %33 : vector<16x256xf32> to vector<16x256xbf16>
    %c0_24 = arith.constant 0 : index
    %c0_25 = arith.constant 0 : index
    %c0_26 = arith.constant 0 : index
    %35 = vector.load %arg9[%c0_24, %c0_25, %c0_26] : memref<1x16x256xbf16, #tpu.memory_space<vmem>>, vector<1x16x256xbf16>
    %36 = vector.shape_cast %35 : vector<1x16x256xbf16> to vector<16x256xbf16>
    %37 = vector.shape_cast %34 : vector<16x256xbf16> to vector<1x16x256xbf16>
    tpu.vector_store %arg9[%c0_24, %c0_25, %c0_26], %37 {strides = array<i32>} : memref<1x16x256xbf16, #tpu.memory_space<vmem>>, vector<1x16x256xbf16>,
    %38 = vector.extract_strided_slice %32 {offsets = [16, 0], sizes = [16, 256], strides = [1, 1]} : vector<32x256xf32> to vector<16x256xf32>
    %39 = arith.truncf %38 : vector<16x256xf32> to vector<16x256xbf16>
    %c0_27 = arith.constant 0 : index
    %c0_28 = arith.constant 0 : index
    %c0_29 = arith.constant 0 : index
    %40 = vector.load %arg10[%c0_27, %c0_28, %c0_29] : memref<1x16x256xbf16, #tpu.memory_space<vmem>>, vector<1x16x256xbf16>
    %41 = vector.shape_cast %40 : vector<1x16x256xbf16> to vector<16x256xbf16>
    %42 = vector.shape_cast %39 : vector<16x256xbf16> to vector<1x16x256xbf16>
    tpu.vector_store %arg10[%c0_27, %c0_28, %c0_29], %42 {strides = array<i32>} : memref<1x16x256xbf16, #tpu.memory_space<vmem>>, vector<1x16x256xbf16>,
    return
  }
  func.func @transform_0(%arg0: i32, %arg1: i32) -> (i32, i32, i32) {
    %c0_i32 = arith.constant 0 : i32
    %c0_i32_0 = arith.constant 0 : i32
    return %arg0, %c0_i32, %arg1 : i32, i32, i32
  }
  func.func @transform_1(%arg0: i32, %arg1: i32) -> (i32, i32) {
    %c0_i32 = arith.constant 0 : i32
    %c0_i32_0 = arith.constant 0 : i32
    %c0_i32_1 = arith.constant 0 : i32
    return %c0_i32, %c0_i32_0 : i32, i32
  }
  func.func @transform_2(%arg0: i32, %arg1: i32) -> (i32, i32) {
    %c0_i32 = arith.constant 0 : i32
    %c0_i32_0 = arith.constant 0 : i32
    %c0_i32_1 = arith.constant 0 : i32
    return %c0_i32, %c0_i32_0 : i32, i32
  }
  func.func @transform_3(%arg0: i32, %arg1: i32) -> (i32, i32, i32) {
    %c0_i32 = arith.constant 0 : i32
    %c0_i32_0 = arith.constant 0 : i32
    %c0_i32_1 = arith.constant 0 : i32
    %c0_i32_2 = arith.constant 0 : i32
    return %c0_i32, %c0_i32_0, %c0_i32_1 : i32, i32, i32
  }
  func.func @transform_4(%arg0: i32, %arg1: i32) -> (i32, i32, i32) {
    %c0_i32 = arith.constant 0 : i32
    %c0_i32_0 = arith.constant 0 : i32
    %c0_i32_1 = arith.constant 0 : i32
    %c0_i32_2 = arith.constant 0 : i32
    return %c0_i32, %c0_i32_0, %c0_i32_1 : i32, i32, i32
  }
  func.func @transform_5(%arg0: i32, %arg1: i32) -> (i32, i32) {
    %c0_i32 = arith.constant 0 : i32
    %c0_i32_0 = arith.constant 0 : i32
    %c0_i32_1 = arith.constant 0 : i32
    return %c0_i32, %c0_i32_0 : i32, i32
  }
  func.func @transform_6(%arg0: i32, %arg1: i32) -> (i32, i32) {
    %c0_i32 = arith.constant 0 : i32
    %c0_i32_0 = arith.constant 0 : i32
    %c0_i32_1 = arith.constant 0 : i32
    return %c0_i32, %c0_i32_0 : i32, i32
  }
  func.func @transform_7(%arg0: i32, %arg1: i32) -> (i32, i32, i32) {
    %c0_i32 = arith.constant 0 : i32
    %c0_i32_0 = arith.constant 0 : i32
    return %arg0, %c0_i32, %arg1 : i32, i32, i32
  }
  func.func @transform_8(%arg0: i32, %arg1: i32) -> (i32, i32, i32) {
    %c0_i32 = arith.constant 0 : i32
    %c0_i32_0 = arith.constant 0 : i32
    return %arg0, %c0_i32, %arg1 : i32, i32, i32
  }
}

</mosaic_0001>

<bundles_post_ra>
// kernel: tpu_custom_call.1
= control target key start
LH: loop header
LB: loop body
LE: loop exit
PB: predicated region body
PF: predicated region fallthrough
CT: control target
= control target key end

     0   :  { %s1705_s0 = inlined_call_operand.vmem [shape: f32[2,32,200], index: 0, kind: input, shape index: {}]   ;;  %s1706_s1 = inlined_call_operand.hbm [shape: bf16[32,32], index: 1, kind: input, shape index: {}]   ;;  %s1707_s2 = inlined_call_operand.vmem [shape: f32[32,1], index: 2, kind: input, shape index: {}]   ;;  %s1708_s3 = inlined_call_operand.hbm [shape: bf16[2,32,32], index: 3, kind: input, shape index: {}]   ;;  %s1709_s4 = inlined_call_operand.vmem [shape: f32[2,32,1], index: 4, kind: input, shape index: {}]   ;;  %s1710_s5 = inlined_call_operand.hbm [shape: bf16[32,32], index: 5, kind: input, shape index: {}]   ;;  %s1711_s6 = inlined_call_operand.vmem [shape: f32[32,1], index: 6, kind: input, shape index: {}]   ;;  %s1712_s7 = inlined_call_operand.hbm [shape: bf16[2,16,200], index: 7, kind: output, shape index: {0}]   ;;  %s1713_s8 = inlined_call_operand.hbm [shape: bf16[2,16,200], index: 8, kind: output, shape index: {1}]  }
   0x1   :  { %1717 = sst [smem:[#allocation19_spill]] %s1708_s3 }
   0x2   :  { %14 = vsyncpa [#allocation3], 0 }
   0x3   :  { %15 = vsyncpa [#allocation6], 0 }
   0x4   :  { %16 = vsyncpa [#allocation4], 0 }
   0x5   :  { %18 = vsyncpa [#allocation4 + $0x1], 0 }
   0x6   :  { %19 = vsyncpa [#allocation10], 0 }
   0x7   :  { %21 = vsyncpa [#allocation10 + $0x1], 0  ;;  %s1471_s27 = smov 0   ;;  %s1473_s28 = smov 0  }
   0x8   :  { %s1475_s29 = smov 0   ;;  %s1477_s30 = smov 0  }
   0x9   :  { %s1479_s9 = smov 0   ;;  %s1481_s10 = smov 0  }
   0xa LB: > { %1718 = sst [smem:[#allocation15_spill]] %s1404_s29  ;;  %s975_s11 = sadd.s32 4294967295, %s1416_s10   ;;  %s1416_s10 = sphi %s1481_s10, %s27_s10   ;;  %s1412_s9 = sphi %s1479_s9, %s1731_s9   ;;  %s1408_s30 = sphi %s1477_s30, %s1730_s30   ;;  %s1404_s29 = sphi %s1475_s29, %s1729_s29   ;;  %s1400_s28 = sphi %s1473_s28, %s1733_s28   ;;  %s1396_s27 = sphi %s1471_s27, %s1732_s27  }
   0xb   : > { %1719 = sst [smem:[#allocation16_spill]] %s1412_s9  ;;  %s976_s12 = sadd.s32 4294967294, %s1416_s10  }
   0xc   : > { %s39_s13 = sadd.s32 1, %s1412_s9  ;;  %s202_s14 = sadd.s32 1, %s1404_s29 }
   0xd   : > { %p41_p0 = scmp.ge.s32.totalorder %s39_s13, 2  ;;  %p212_p1 = scmp.ne.s32.totalorder %s1404_s29, %s1400_s28 }
   0xe   : > { %p213_p2 = scmp.eq.s32.totalorder %s975_s11, 1  ;;  %p218_p3 = scmp.ne.s32.totalorder %s1400_s28, %s1396_s27 }
   0xf   : > { %s1735_s13 = smov (%p41_p0, %s39_s13), 0  ;;  %p219_p5 = scmp.eq.s32.totalorder %s976_s12, 1 }
  0x10   : > { %1720 = sst [smem:[#allocation17_spill]] %s1735_s13  ;;  %p1511_p4 = por %p213_p2, %p212_p1 }
  0x11   : > { %s197_s16 = ssub.s32 %s1412_s9, %s1735_s13  ;;  %p977_p6 = scmp.ge.s32.totalorder %s1416_s10, 1 }
  0x12   : > { %p200_p7 = scmp.eq.s32.totalorder %s197_s16, 0  ;;  %p1518_p8 = por %p219_p5, %p218_p3 }
  0x13   : > { %p254_p9 = scmp.lt.s32.totalorder %s1416_s10, 3  ;;  %p1530_p11 = scmp.eq.s32.totalorder %s975_s11, 0 }
  0x14   : > { %s1524_s18 = scalar_select %p200_p7, %s1404_s29, %s202_s14  }
  0x15   : > { %p1526_p10 = pnand %p977_p6, %p254_p9  ;;  %s1726_s3 = sld [smem:[#allocation19_spill]] }
  0x16   : > { %1723 = sst [smem:[#allocation18_spill]] %s1524_s18  ;;  %s1418_s25 = smov [#allocation5]  }
  0x17   : > { %p1077_p12 = pneg %p1526_p10  ;;  %s284_s26 = sshll.u32 %s1418_s25, 4  ;;  %s285_s26 = int_to_ptr.vmem [resolvable:$true] %s284_s26 }
  0x18   : > { %s1419_s11 = smov 64   ;;  %s1420_s12 = smov 4  }
  0x19   : > { %p1541_p13 = pnand %p1530_p11, %p1077_p12  ;;  %s265_s21 = sshll.u32 %s1706_s1, 4  ;;  %s266_s21 = int_to_ptr.hbm [resolvable:$true] %s265_s21 }
  0x1a   : > { %s1421_s22 = smov [#allocation2]   ;;  %s299_s18 = sshll.u32 %s1710_s5, 4  ;;  %s300_s18 = int_to_ptr.hbm [resolvable:$true] %s299_s18 }
  0x1b   : > { %s282_s23 = sshll.u32 %s1726_s3, 4  ;;  %s267_s3 = sshll.u32 %s1421_s22, 4  ;;  %s283_s23 = int_to_ptr.hbm [resolvable:$true] %s282_s23  ;;  %s268_s3 = int_to_ptr.vmem [resolvable:$true] %s267_s3 }
  0x1c   : > { %1083 = dma.hbm_to_vmem [thread:$0]  (!%p1541_p13), %s283_s23, 512, %s285_s26, [#allocation6], %s1419_s11, %s1419_s11, %s1420_s12  }
  0x1d   : > { %1080 = dma.hbm_to_vmem [thread:$0]  (!%p1541_p13), %s266_s21, 256, %s268_s3, [#allocation3], %s1419_s11, %s1419_s11, %s1420_s12  }
  0x1e   : > { %s1422_s25 = smov [#allocation7]   ;;  %333 = sbr.rel (%p1526_p10) target bundleno = 728 (0x2d8), region = 48 }
  0x1f   : > { %s301_s29 = sshll.u32 %s1422_s25, 4  ;;  %s302_s29 = int_to_ptr.vmem [resolvable:$true] %s301_s29 }
  0x20   : > { %1086 = dma.hbm_to_vmem [thread:$0]  (!%p1541_p13), %s300_s18, 256, %s302_s29, [#allocation6], %s1419_s11, %s1419_s11, %s1420_s12  }
  0x23   : > { %1379 = dma.done.wait (%p1530_p11), [#allocation3], 256  }
  0x24   : > { %1381 = vsyncadd (%p1530_p11), [#allocation3], 4294967040 }
  0x25   : > { %1383 = dma.done.wait (%p1530_p11), [#allocation6], 768  }
  0x26   : > { %1385 = vsyncadd (%p1530_p11), [#allocation6], 4294966528  ;;  %p388_p0 = scmp.lt.s32.totalorder %s1408_s30, 1  ;;  %v1423_v0 = vmov 0   ;;  %v418_v1 = vld [vmem:[%s1707_s2 + $0x10] sm:$0xff]  ;;  %v416_v13 = vld [vmem:[%s1707_s2] sm:$0xff] }
  0x27   : > { %1157 = vset.pattern.permute.xlu0 %v1423_v0  ;;  %1158 = vset.pattern.permute.xlu1 %v1423_v0  ;;  %v419_v15 = vld [vmem:[%s1707_s2 + $0x18] sm:$0xff]  ;;  %v1051_v16 = vld [vmem:[#allocation2] sm:$0xff]  ;;  %vm450_vm0 = vcmask 261120   ;;  %v417_v17 = vld [vmem:[%s1707_s2 + $0x8] sm:$0xff]  ;;  %s1637_s13 = sand.u32 1, %s1400_s28   ;;  %s1059_s19 = sshll.u32 %s1408_s30, 4 }
  0x28   : > { %s389_s3 = scalar_select %p388_p0, %s1408_s30, 1  ;;  %1159 = vset.pattern.permute.xlu2 %v1423_v0  ;;  %432 = vperm.xlu0 %1157, %v418_v1   ;;  %v511_v18 = vld [vmem:[%s1709_s4] sm:$0xff]  ;;  %v512_v19 = vld [vmem:[%s1709_s4 + $0x8] sm:$0xff]  ;;  %v1017_v20 = vld [vmem:[%s1709_s4 + $0x38] sm:$0xff] }
  0x29   : > { %422 = vperm.xlu1 %1158, %v416_v13   ;;  %v1052_v21 = vld [vmem:[#allocation2 + $0x8] sm:$0xff]  ;;  %v1014_v22 = vld [vmem:[%s1709_s4 + $0x20] sm:$0xff]  ;;  %v704_v25 = vld [vmem:[%s1711_s6 + $0x18] sm:$0xff]  ;;  %s806_s24 = scalar_lea.hbm %s1712_s7, %s1059_s19  ;;  %s788_s14 = scalar_lea.sflag [#allocation4], %s1637_s13 }
  0x2a   : > { %s1050_s29 = sshll.u32 %s389_s3, 6  ;;  %v701_v23 = vld [vmem:[%s1711_s6] sm:$0xff]  ;;  %v702_v24 = vld [vmem:[%s1711_s6 + $0x8] sm:$0xff]  ;;  %v513_v46 = vld [vmem:[%s1709_s4 + $0x10] sm:$0xff]  ;;  %s809_s12 = sshll.u32 %s806_s24, 4  ;;  %s810_s12 = int_to_ptr.hbm [resolvable:$true] %s809_s12 }
  0x2b   : > { %s395_s18 = scalar_lea.vmem %s1705_s0, %s1050_s29  ;;  %527 = vperm.xlu2 %1159, %v513_v46   ;;  %v514_v52 = vld [vmem:[%s1709_s4 + $0x18] sm:$0xff]  ;;  %v1053_v60 = vld [vmem:[#allocation5] sm:$0xff]  ;;  %v1015_v62 = vld [vmem:[%s1709_s4 + $0x28] sm:$0xff]  ;;  %s1312_s16 = sshra.s32 %s810_s12, 4  ;;  %s1313_s16 = int_to_ptr.hbm [resolvable:$true] %s1312_s16 }
  0x2c   : > { %v404_v2 = vld [vmem:[%s395_s18 + $0x20] sm:$0xff]  ;;  %v406_v3 = vld [vmem:[%s395_s18 + $0x30] sm:$0xff]  ;;  %v405_v5 = vld [vmem:[%s395_s18 + $0x28] sm:$0xff]  ;;  %s1314_s21 = scalar_lea.hbm %s1313_s16, 16  ;;  %s1318_s3 = scalar_lea.hbm %s1712_s7, 32 }
  0x2d   : > { %v410_v4 = vpack.c.bf16 %v406_v3, %v404_v2  ;;  %v407_v6 = vld [vmem:[%s395_s18 + $0x38] sm:$0xff]  ;;  %v400_v7 = vld [vmem:[%s395_s18] sm:$0xff]  ;;  %v402_v9 = vld [vmem:[%s395_s18 + $0x10] sm:$0xff]  ;;  %p1315_p1 = scmp.ne.s32.totalorder %s1313_s16, %s1314_s21  ;;  %p1319_p5 = scmp.lt.s32.totalorder %s1313_s16, %s1712_s7 }
  0x2e   : > { %v411_v8 = vpack.c.bf16 %v407_v6, %v405_v5  ;;  %v401_v10 = vld [vmem:[%s395_s18 + $0x8] sm:$0xff]  ;;  %v403_v11 = vld [vmem:[%s395_s18 + $0x18] sm:$0xff]  ;;  %v408_v12 = vpack.c.bf16 %v402_v9, %v400_v7  ;;  %v1016_v61 = vld [vmem:[%s1709_s4 + $0x30] sm:$0xff]  ;;  %s986_s18 = sshll.u32 %s1637_s13, 4  ;;  %p1320_p6 = scmp.lt.s32.totalorder %s1318_s3, %s1314_s21 }
  0x2f   : > { %463 = vmatpush.bf16.msra.mxu0 %v410_v4  ;;  %v409_v14 = vpack.c.bf16 %v403_v11, %v401_v10  ;;  %v1054_v63 = vld [vmem:[#allocation5 + $0x8] sm:$0xff]  ;;  %v703_v0 = vld [vmem:[%s1711_s6 + $0x10] sm:$0xff]  ;;  %s379_s26 = scalar_lea.vmem [#allocation8], %s986_s18  ;;  %p1316_p2 = pnand %p1315_p1, %p1511_p4 }
  0x30   : > { %482 = vmatpush.bf16.msra.mxu1 %v411_v8  ;;  %437 = vperm.xlu0 %1157, %v419_v15   ;;  %s807_s11 = sshll.u32 %s379_s26, 4  ;;  %p1321_p7 = por %p1320_p6, %p1319_p5  ;;  %s808_s11 = int_to_ptr.vmem [resolvable:$true] %s807_s11 }
  0x31   : > { %427 = vperm.xlu1 %1158, %v417_v17   ;;  %p1317_p3 = pneg %p1316_p2 }
  0x33   : > { %464 = vmatpush.bf16.msra.mxu0 %v408_v12  ;;  %532 = vperm.xlu2 %1159, %v514_v52   ;;  %p1322_p9 = pnand %p1321_p7, %p1317_p3 }
  0x34   : > { %483 = vmatpush.bf16.msra.mxu1 %v409_v14 }
  0x36   : > { %998 = vmatmul.msk.bf16.vlgmr.msra.gmra.mxu0 %vm450_vm0, %v1051_v16 }
  0x37   : > { %1000 = vmatmul.msk.bf16.vlgmr.msra.gmra.mxu1 %vm450_vm0, %v1051_v16 }
  0x38   : > { %517 = vperm.xlu0 %1157, %v511_v18  }
  0x39   : > { %522 = vperm.xlu1 %1158, %v512_v19  }
  0x3b   : > { %623 = vperm.xlu2 %1159, %v1016_v61  }
  0x40   : > { %628 = vperm.xlu0 %1157, %v1017_v20  }
  0x41   : > { %613 = vperm.xlu1 %1158, %v1014_v22  }
  0x43   : > { %618 = vperm.xlu2 %1159, %v1015_v62  }
  0x46   : > { %999 = vmatmul.msk.bf16.gmra.mxu0 %vm450_vm0, %v1052_v21 }
  0x47   : > { %1001 = vmatmul.msk.bf16.gmra.mxu1 %vm450_vm0, %v1052_v21 }
  0x48   : > { %707 = vperm.xlu0 %1157, %v701_v23  }
  0x49   : > { %712 = vperm.xlu1 %1158, %v702_v24  }
  0x4b   : > { %717 = vperm.xlu2 %1159, %v703_v0  }
  0x50   : > { %722 = vperm.xlu0 %1157, %v704_v25  }
  0x85   : > { %v528_v5 = vpop.permute.xlu2 %527 }
  0x8d   : > { %v533_v11 = vpop.permute.xlu2 %532 }
  0x9a   : > { %v433_v30 = vpop.permute.xlu0 %432 }
  0x9b   : > { %v423_v31 = vpop.permute.xlu1 %422 }
  0xa2   : > { %v438_v36 = vpop.permute.xlu0 %437 }
  0xa3   : > { %v428_v37 = vpop.permute.xlu1 %427 }
  0xaa   : > { %v518_v16 = vpop.permute.xlu0 %517 }
  0xab   : > { %v523_v10 = vpop.permute.xlu1 %522 }
  0xb3   : > { %v466_v26 = vpop.f32.mrf.mxu0 }
  0xb4   : > { %v485_v27 = vpop.f32.mrf.mxu1  ;;  %v467_v44 = vadd.f32 %v466_v26, %v423_v31 }
  0xb5   : > { %v486_v45 = vadd.f32 %v485_v27, %v423_v31 }
  0xbb   : > { %v468_v28 = vpop.f32.mrf.mxu0 }
  0xbc   : > { %v487_v29 = vpop.f32.mrf.mxu1  ;;  %v469_v39 = vadd.f32 %v468_v28, %v428_v37 }
  0xbd   : > { %v488_v42 = vadd.f32 %v487_v29, %v428_v37 }
  0xc3   : > { %v471_v32 = vpop.f32.mrf.mxu0 }
  0xc4   : > { %v490_v33 = vpop.f32.mrf.mxu1  ;;  %v472_v34 = vadd.f32 %v471_v32, %v433_v30 }
  0xc5   : > { %v491_v35 = vadd.f32 %v490_v33, %v433_v30  ;;  %v1055_v33 = vld [vmem:[#allocation5 + $0x10] sm:$0xff] }
  0xc6   : > { %1160 = vtanh.f32 %v472_v34  ;;  %v1056_v34 = vld [vmem:[#allocation5 + $0x18] sm:$0xff] }
  0xc7   : > { %1162 = vtanh.f32 %v491_v35 }
  0xcb   : > { %v473_v38 = vpop.f32.mrf.mxu0 }
  0xcc   : > { %v474_v40 = vadd.f32 %v473_v38, %v438_v36  ;;  %v492_v41 = vpop.f32.mrf.mxu1  ;;  %v1161_v47 = vpop.eup %1160 }
  0xcd   : > { %v493_v43 = vadd.f32 %v492_v41, %v438_v36  ;;  %v1163_v48 = vpop.eup %1162 }
  0xce   : > { %1164 = vtanh.f32 %v474_v40 }
  0xcf   : > { %1166 = vtanh.f32 %v493_v43 }
  0xd0   : > { %1168 = vtanh.f32 %v469_v39  ;;  %v624_v39 = vpop.permute.xlu2 %623 }
  0xd1   : > { %1170 = vtanh.f32 %v488_v42 }
  0xd2   : > { %1172 = vtanh.f32 %v467_v44  ;;  %v629_v44 = vpop.permute.xlu0 %628 }
  0xd3   : > { %1174 = vtanh.f32 %v486_v45 }
  0xd4   : > { %v1165_v49 = vpop.eup %1164 }
  0xd5   : > { %v1167_v50 = vpop.eup %1166  ;;  %v505_v51 = vpack.c.bf16 %v1165_v49, %v1161_v47 }
  0xd6   : > { %v1169_v53 = vpop.eup %1168  ;;  %v506_v54 = vpack.c.bf16 %v1167_v50, %v1163_v48  ;;  %v614_v50 = vpop.permute.xlu1 %613 }
  0xd7   : > { %v1171_v55 = vpop.eup %1170  ;;  %557 = vmatpush.bf16.msra.mxu2 %v505_v51 }
  0xd8   : > { %v1173_v56 = vpop.eup %1172  ;;  %576 = vmatpush.bf16.msra.mxu3 %v506_v54  ;;  %v619_v45 = vpop.permute.xlu2 %618 }
  0xd9   : > { %v1175_v57 = vpop.eup %1174  ;;  %v503_v58 = vpack.c.bf16 %v1169_v53, %v1173_v56 }
  0xda   : > { %v504_v59 = vpack.c.bf16 %v1171_v55, %v1175_v57 }
  0xdb   : > { %558 = vmatpush.bf16.msra.mxu2 %v503_v58 }
  0xdc   : > { %577 = vmatpush.bf16.msra.mxu3 %v504_v59 }
  0xde   : > { %1010 = vmatmul.msk.bf16.vlgmr.msra.gmra.mxu2 %vm450_vm0, %v1053_v60 }
  0xdf   : > { %1012 = vmatmul.msk.bf16.vlgmr.msra.gmra.mxu3 %vm450_vm0, %v1053_v60 }
  0xee   : > { %1011 = vmatmul.msk.bf16.gmra.mxu2 %vm450_vm0, %v1054_v63 }
  0xef   : > { %1013 = vmatmul.msk.bf16.gmra.mxu3 %vm450_vm0, %v1054_v63 }
 0x161   : > { %v560_v1 = vpop.f32.mrf.mxu2 }
 0x162   : > { %v579_v2 = vpop.f32.mrf.mxu3  ;;  %v561_v19 = vadd.f32 %v560_v1, %v518_v16 }
 0x163   : > { %v580_v20 = vadd.f32 %v579_v2, %v518_v16 }
 0x169   : > { %v562_v3 = vpop.f32.mrf.mxu2 }
 0x16a   : > { %v581_v4 = vpop.f32.mrf.mxu3  ;;  %v563_v13 = vadd.f32 %v562_v3, %v523_v10  ;;  %v1057_v3 = vld [vmem:[#allocation7] sm:$0xff] }
 0x16b   : > { %v582_v17 = vadd.f32 %v581_v4, %v523_v10  ;;  %v1058_v4 = vld [vmem:[#allocation7 + $0x8] sm:$0xff] }
 0x171   : > { %v565_v6 = vpop.f32.mrf.mxu2 }
 0x172   : > { %v584_v7 = vpop.f32.mrf.mxu3  ;;  %v566_v8 = vadd.f32 %v565_v6, %v528_v5 }
 0x173   : > { %v585_v9 = vadd.f32 %v584_v7, %v528_v5  ;;  %v708_v5 = vpop.permute.xlu0 %707 }
 0x174   : > { %1176 = vtanh.f32 %v566_v8 }
 0x175   : > { %1178 = vtanh.f32 %v585_v9 }
 0x179   : > { %v567_v12 = vpop.f32.mrf.mxu2 }
 0x17a   : > { %v568_v14 = vadd.f32 %v567_v12, %v533_v11  ;;  %v586_v15 = vpop.f32.mrf.mxu3  ;;  %v1177_v21 = vpop.eup %1176 }
 0x17b   : > { %v587_v18 = vadd.f32 %v586_v15, %v533_v11  ;;  %v1179_v22 = vpop.eup %1178  ;;  %v713_v11 = vpop.permute.xlu1 %712 }
 0x17c   : > { %1180 = vtanh.f32 %v568_v14 }
 0x17d   : > { %1182 = vtanh.f32 %v587_v18 }
 0x17e   : > { %1184 = vtanh.f32 %v563_v13 }
 0x17f   : > { %1186 = vtanh.f32 %v582_v17 }
 0x180   : > { %1188 = vtanh.f32 %v561_v19 }
 0x181   : > { %1190 = vtanh.f32 %v580_v20 }
 0x182   : > { %v1181_v23 = vpop.eup %1180 }
 0x183   : > { %v1183_v24 = vpop.eup %1182  ;;  %v599_v25 = vpack.c.bf16 %v1181_v23, %v1177_v21 }
 0x184   : > { %v1185_v26 = vpop.eup %1184  ;;  %v600_v27 = vpack.c.bf16 %v1183_v24, %v1179_v22 }
 0x185   : > { %v1187_v28 = vpop.eup %1186  ;;  %653 = vmatpush.bf16.msrb.mxu0 %v599_v25 }
 0x186   : > { %v1189_v29 = vpop.eup %1188  ;;  %672 = vmatpush.bf16.msrb.mxu1 %v600_v27 }
 0x187   : > { %v1191_v30 = vpop.eup %1190  ;;  %v597_v31 = vpack.c.bf16 %v1185_v26, %v1189_v29 }
 0x188   : > { %v598_v32 = vpack.c.bf16 %v1187_v28, %v1191_v30 }
 0x189   : > { %654 = vmatpush.bf16.msrb.mxu0 %v597_v31 }
 0x18a   : > { %673 = vmatpush.bf16.msrb.mxu1 %v598_v32 }
 0x18c   : > { %1026 = vmatmul.msk.bf16.vlgmr.msrb.gmra.mxu0 %vm450_vm0, %v1055_v33 }
 0x18d   : > { %1028 = vmatmul.msk.bf16.vlgmr.msrb.gmra.mxu1 %vm450_vm0, %v1055_v33 }
 0x19c   : > { %1027 = vmatmul.msk.bf16.gmra.mxu0 %vm450_vm0, %v1056_v34 }
 0x19d   : > { %1029 = vmatmul.msk.bf16.gmra.mxu1 %vm450_vm0, %v1056_v34 }
 0x209   : > { %v656_v35 = vpop.f32.mrf.mxu0 }
 0x20a   : > { %v675_v36 = vpop.f32.mrf.mxu1  ;;  %v657_v53 = vadd.f32 %v656_v35, %v614_v50 }
 0x20b   : > { %v676_v54 = vadd.f32 %v675_v36, %v614_v50 }
 0x211   : > { %v658_v37 = vpop.f32.mrf.mxu0 }
 0x212   : > { %v677_v38 = vpop.f32.mrf.mxu1  ;;  %v659_v47 = vadd.f32 %v658_v37, %v619_v45 }
 0x213   : > { %v678_v51 = vadd.f32 %v677_v38, %v619_v45 }
 0x219   : > { %v661_v40 = vpop.f32.mrf.mxu0 }
 0x21a   : > { %v680_v41 = vpop.f32.mrf.mxu1  ;;  %v662_v42 = vadd.f32 %v661_v40, %v624_v39 }
 0x21b   : > { %v681_v43 = vadd.f32 %v680_v41, %v624_v39 }
 0x21c   : > { %1192 = vtanh.f32 %v662_v42 }
 0x21d   : > { %1194 = vtanh.f32 %v681_v43 }
 0x221   : > { %v663_v46 = vpop.f32.mrf.mxu0 }
 0x222   : > { %v664_v48 = vadd.f32 %v663_v46, %v629_v44  ;;  %v682_v49 = vpop.f32.mrf.mxu1  ;;  %v1193_v55 = vpop.eup %1192 }
 0x223   : > { %v683_v52 = vadd.f32 %v682_v49, %v629_v44  ;;  %v1195_v56 = vpop.eup %1194 }
 0x224   : > { %1196 = vtanh.f32 %v664_v48 }
 0x225   : > { %1198 = vtanh.f32 %v683_v52 }
 0x226   : > { %1200 = vtanh.f32 %v659_v47 }
 0x227   : > { %1202 = vtanh.f32 %v678_v51 }
 0x228   : > { %1204 = vtanh.f32 %v657_v53 }
 0x229   : > { %1206 = vtanh.f32 %v676_v54 }
 0x22a   : > { %v1197_v57 = vpop.eup %1196 }
 0x22b   : > { %v1199_v58 = vpop.eup %1198  ;;  %v695_v59 = vpack.c.bf16 %v1197_v57, %v1193_v55 }
 0x22c   : > { %v1201_v60 = vpop.eup %1200  ;;  %v696_v61 = vpack.c.bf16 %v1199_v58, %v1195_v56 }
 0x22d   : > { %v1203_v62 = vpop.eup %1202  ;;  %747 = vmatpush.bf16.msrb.mxu2 %v695_v59 }
 0x22e   : > { %v1205_v63 = vpop.eup %1204  ;;  %766 = vmatpush.bf16.msrb.mxu3 %v696_v61 }
 0x22f   : > { %v1207_v0 = vpop.eup %1206  ;;  %v693_v1 = vpack.c.bf16 %v1201_v60, %v1205_v63 }
 0x230   : > { %v694_v2 = vpack.c.bf16 %v1203_v62, %v1207_v0 }
 0x231   : > { %748 = vmatpush.bf16.msrb.mxu2 %v693_v1 }
 0x232   : > { %767 = vmatpush.bf16.msrb.mxu3 %v694_v2 }
 0x234   : > { %1038 = vmatmul.msk.bf16.vlgmr.msrb.gmra.mxu2 %vm450_vm0, %v1057_v3 }
 0x235   : > { %1040 = vmatmul.msk.bf16.vlgmr.msrb.gmra.mxu3 %vm450_vm0, %v1057_v3 }
 0x244   : > { %1039 = vmatmul.msk.bf16.gmra.mxu2 %vm450_vm0, %v1058_v4 }
 0x245   : > { %1041 = vmatmul.msk.bf16.gmra.mxu3 %vm450_vm0, %v1058_v4 }
 0x2b7   : > { %v750_v6 = vpop.f32.mrf.mxu2 }
 0x2b8   : > { %v751_v7 = vadd.f32 %v750_v6, %v708_v5  ;;  %v769_v8 = vpop.f32.mrf.mxu3 }
 0x2b9   : > { %v770_v9 = vadd.f32 %v769_v8, %v708_v5 }
 0x2bb   : > { %v779_v10 = vpack.c.bf16 %v770_v9, %v751_v7 }
 0x2bd   : > { %781 = vst [vmem:[%s379_s26] sm:$0xff] %v779_v10 }
 0x2bf   : > { %v752_v12 = vpop.f32.mrf.mxu2 }
 0x2c0   : > { %v753_v13 = vadd.f32 %v752_v12, %v713_v11  ;;  %v771_v14 = vpop.f32.mrf.mxu3 }
 0x2c1   : > { %v772_v15 = vadd.f32 %v771_v14, %v713_v11 }
 0x2c3   : > { %v780_v16 = vpack.c.bf16 %v772_v15, %v753_v13 }
 0x2c5   : > { %782 = vst [vmem:[%s379_s26 + $0x8] sm:$0xff] %v780_v16 }
 0x2c6   : > { %1325 = shalt.err (!%p1322_p9)
}
 0x2c7   : > { %s1424_s23 = smov 128   ;;  %s1425_s20 = smov 8   ;;  %v718_v17 = vpop.permute.xlu2 %717  ;;  %v755_v18 = vpop.f32.mrf.mxu2 }
 0x2c8   : > { %1073 = dma.vmem_to_hbm [thread:$0]  (%p1511_p4), %s808_s11, 256, %s810_s12, %s788_s14, %s1424_s23, %s1424_s23, %s1425_s20   ;;  %v756_v19 = vadd.f32 %v755_v18, %v718_v17  ;;  %v774_v20 = vpop.f32.mrf.mxu3  ;;  %v723_v23 = vpop.permute.xlu0 %722 }
 0x2c9   : > { %v775_v21 = vadd.f32 %v774_v20, %v718_v17  ;;  %s386_s24 = scalar_lea.vmem [#allocation9], %s986_s18  ;;  %s825_s21 = scalar_lea.hbm %s1713_s8, %s1059_s19 }
 0x2ca   : > { %s826_s22 = sshll.u32 %s386_s24, 4  ;;  %s828_s11 = sshll.u32 %s825_s21, 4  ;;  %s827_s22 = int_to_ptr.vmem [resolvable:$true] %s826_s22  ;;  %s829_s11 = int_to_ptr.hbm [resolvable:$true] %s828_s11 }
 0x2cb   : > { %v783_v22 = vpack.c.bf16 %v775_v21, %v756_v19  ;;  %s793_s12 = scalar_lea.sflag [#allocation10], %s1637_s13  ;;  %s1340_s18 = sshra.s32 %s829_s11, 4  ;;  %s1341_s18 = int_to_ptr.hbm [resolvable:$true] %s1340_s18 }
 0x2cc   : > { %s1342_s30 = scalar_lea.hbm %s1341_s18, 16  ;;  %s1346_s25 = scalar_lea.hbm %s1713_s8, 32 }
 0x2cd   : > { %785 = vst [vmem:[%s386_s24] sm:$0xff] %v783_v22  ;;  %p1343_p10 = scmp.ne.s32.totalorder %s1341_s18, %s1342_s30  ;;  %p1347_p13 = scmp.lt.s32.totalorder %s1341_s18, %s1713_s8 }
 0x2ce   : > { %p1348_p0 = scmp.lt.s32.totalorder %s1346_s25, %s1342_s30 }
 0x2cf   : > { %v757_v24 = vpop.f32.mrf.mxu2  ;;  %p1344_p11 = pnand %p1343_p10, %p1511_p4 }
 0x2d0   : > { %v758_v25 = vadd.f32 %v757_v24, %v723_v23  ;;  %v776_v26 = vpop.f32.mrf.mxu3  ;;  %p1349_p1 = por %p1348_p0, %p1347_p13 }
 0x2d1   : > { %v777_v27 = vadd.f32 %v776_v26, %v723_v23  ;;  %p1345_p12 = pneg %p1344_p11 }
 0x2d3   : > { %v784_v28 = vpack.c.bf16 %v777_v27, %v758_v25  ;;  %p1350_p2 = pnand %p1349_p1, %p1345_p12 }
 0x2d5   : > { %786 = vst [vmem:[%s386_s24 + $0x8] sm:$0xff] %v784_v28 }
 0x2d6   : > { %1353 = shalt.err (!%p1350_p2)
}
 0x2d7   : > { %1074 = dma.vmem_to_hbm [thread:$0]  (%p1511_p4), %s827_s22, 256, %s829_s11, %s793_s12, %s1424_s23, %s1424_s23, %s1425_s20  }
 0x2d8 PF: > { %p1100_p3 = scmp.ge.s32.totalorder %s1416_s10, 2  ;;  %s843_s13 = sand.u32 1, %s1396_s27  }
 0x2d9   : > { %s844_s9 = scalar_lea.sflag [#allocation4], %s843_s13 }
 0x2da   : > { %p1088_p5 = pnand %p1100_p3, %p1518_p8 }
 0x2dc   : > { %p1089_p6 = pneg %p1088_p5 }
 0x2de   : > { %1387 = dma.done.wait (%p1089_p6), %s844_s9, 256  }
 0x2df   : > { %1389 = vsyncadd (%p1089_p6), %s844_s9, 4294967040  ;;  %s854_s24 = scalar_lea.sflag [#allocation10], %s843_s13 }
 0x2e0   : > { %1391 = dma.done.wait (%p1089_p6), %s854_s24, 256  }
 0x2e1   : > { %1393 = vsyncadd (%p1089_p6), %s854_s24, 4294967040  ;;  %s27_s10 = sadd.s32 1, %s1416_s10   ;;  %s1728_s15 = sld [smem:[#allocation15_spill]] }
 0x2e2   : > { %p24_p7 = scmp.ge.s32.totalorder %s27_s10, 4   ;;  %s1729_s29 = sld [smem:[#allocation18_spill]] }
 0x2e3   : > { %s1730_s30 = sld [smem:[#allocation16_spill]]  ;;  %s1732_s27 = smov %s1400_s28 }
 0x2e4   : > { %s1731_s9 = sld [smem:[#allocation17_spill]]  ;;  %26 = sbr.rel (!%p24_p7) target bundleno = 10 (0xa), region = 115 }
 0x2e7   : > { %s1733_s28 = smov %s1728_s15 }
 0x2e9   :  { %860 = vsyncpa [#allocation3], 1 }
 0x2ea   :  { %862 = vsyncpa [#allocation3 + $0x1], 1 }
 0x2eb   :  { %863 = vsyncpa [#allocation6], 1 }
 0x2ec   :  { %864 = vsyncpa [#allocation4], 1 }
 0x2ed   :  { %866 = vsyncpa [#allocation4 + $0x1], 1 }
 0x2ee   :  { %867 = vsyncpa [#allocation10], 1 }
 0x2ef   :  { %869 = vsyncpa [#allocation10 + $0x1], 1 }

</bundles_post_ra>
